<compile_context>
chip_gen: v7x
topology: tpu7x:2x2x1
jax: 0.10.0
libtpu: 0.0.40
codegen_flags: <defaults>
</compile_context>

<pallas_src>
import math
from functools import partial

import jax
import jax.numpy as jnp
from jax import lax
from jax.experimental import pallas as pl
from jax.experimental.pallas import tpu as pltpu

_MASK_VALUE = -1000000.0  # sentinel used by the PyTorch masked_softmax


# ---------------------------------------------------------------------------
# Kernel: one (batch, head, key-tile) step per grid point.
# ---------------------------------------------------------------------------
def _mha_kernel(vl_ref,                              # scalar prefetch: (B,) int32 in SMEM
                q_in_ref, k_in_ref, v_in_ref,        # (1,Tq,Dq) / (1,tk,Dk) / (1,tk,Dv) bf16
                wq_ref, wk_ref, wv_ref, wo_ref,      # per-head weight slabs (bf16)
                o_ref,                               # (1, Tq, nh) output block
                q_scr, m_scr, l_scr, acc_scr, y_scr, # VMEM scratch
                *, tk_tile, scale, use_approx_reciprocal):
    b = pl.program_id(0)
    h = pl.program_id(1)
    t = pl.program_id(2)
    last_h = pl.num_programs(1) - 1
    last_t = pl.num_programs(2) - 1

    # Zero the cross-head output accumulator once per batch element.
    @pl.when((h == 0) & (t == 0))
    def _():
        y_scr[...] = jnp.zeros_like(y_scr)

    # Per-(b, h) init: reset online-softmax state and project Q for this head.
    @pl.when(t == 0)
    def _():
        m_scr[...] = jnp.full_like(m_scr, -jnp.inf)
        l_scr[...] = jnp.zeros_like(l_scr)
        acc_scr[...] = jnp.zeros_like(acc_scr)
        q = jnp.dot(q_in_ref[0], wq_ref[0],
                    preferred_element_type=jnp.float32)        # (Tq, dh) f32 accum
        # 1/sqrt(dh) folded into Q once (hoisted out of the score matmul).
        q_scr[...] = (q * scale).astype(q_scr.dtype)

    # Project this key/value tile for this head (bf16 MXU operands, f32 accumulation).
    k = jnp.dot(k_in_ref[0], wk_ref[0], preferred_element_type=jnp.float32)  # (tk, dh)
    v = jnp.dot(v_in_ref[0], wv_ref[0], preferred_element_type=jnp.float32)  # (tk, dh)

    # Scores for this tile: contract (Tq, dh) with (tk, dh) on dh -> (Tq, tk).
    s = lax.dot_general(q_scr[...], k.astype(jnp.bfloat16),
                        (((1,), (1,)), ((), ())),
                        preferred_element_type=jnp.float32)

    # masked_softmax (1-D valid_lens): key positions >= valid_len get -1e6,
    # then plain softmax (identical to the PyTorch reference).
    vl = vl_ref[b]
    col = lax.broadcasted_iota(jnp.int32, (1, tk_tile), 1) + t * tk_tile
    s = jnp.where(col < vl, s, jnp.float32(_MASK_VALUE))

    # Online softmax update; all statistics in f32.
    m_prev = m_scr[...]
    m_new = jnp.maximum(m_prev, jnp.max(s, axis=-1, keepdims=True))
    alpha = jnp.exp(m_prev - m_new)
    p = jnp.exp(s - m_new)
    l_scr[...] = alpha * l_scr[...] + jnp.sum(p, axis=-1, keepdims=True)
    # TODO(synk): dropout on attention weights omitted (module eval semantics).
    acc_scr[...] = alpha * acc_scr[...] + jnp.dot(
        p.astype(jnp.bfloat16), v.astype(jnp.bfloat16),
        preferred_element_type=jnp.float32)                    # (Tq, dh)
    m_scr[...] = m_new

    # Head finished: normalize and fold W_o in as a per-head block matmul sum:
    #   concat_h(out_h) @ Wo == sum_h out_h @ Wo[h*dh:(h+1)*dh, :]
    @pl.when(t == last_t)
    def _():
        if use_approx_reciprocal:
            out_h = acc_scr[...] * pl.reciprocal(l_scr[...], approx=True)
        else:
            out_h = acc_scr[...] / l_scr[...]                  # exact (default)
        y_scr[...] += jnp.dot(out_h.astype(jnp.bfloat16), wo_ref[0],
                              preferred_element_type=jnp.float32)

    @pl.when((h == last_h) & (t == last_t))
    def _():
        o_ref[0] = y_scr[...].astype(o_ref.dtype)


# ---------------------------------------------------------------------------
# Wrapper
# ---------------------------------------------------------------------------
def _round_up(x, m):
    return (x + m - 1) // m * m


def _block_vmem_bytes(shape, dtype):
    """VMEM bytes of one buffered block, including (8,128)-tile padding."""
    itemsize = jnp.dtype(dtype).itemsize
    dims = list(shape)
    if dims:
        dims[-1] = _round_up(dims[-1], 128)
    if len(dims) >= 2:
        dims[-2] = _round_up(dims[-2], 8 * max(1, 4 // itemsize))
    return math.prod(dims) * itemsize


def _choose_tk_tile(Tk, max_tile=512):
    """Largest key tile <= max_tile that divides Tk (multiple of 8 when tiled)."""
    if Tk <= max_tile:
        return Tk
    t = (max_tile // 8) * 8
    while t >= 8:
        if Tk % t == 0:
            return t
        t -= 8
    # TODO(synk): ragged final key tile when Tk has no multiple-of-8 divisor.
    return Tk


def multi_head_attention(queries, keys, values, valid_lens, params, num_heads,
                         *, tk_tile=None, use_approx_reciprocal=False):
    """Forward pass of the PyTorch MultiHeadAttention module (eval mode)."""
    Wq, Wk, Wv, Wo = params["Wq"], params["Wk"], params["Wv"], params["Wo"]
    B, Tq, Dq = queries.shape
    _, Tk, Dk = keys.shape
    Dv = values.shape[2]
    nh = Wq.shape[1]
    assert nh % num_heads == 0, "num_hiddens must be divisible by num_heads"
    dh = nh // num_heads

    if valid_lens is None:
        vl = jnp.full((B,), Tk, dtype=jnp.int32)
    elif valid_lens.ndim == 1:
        vl = valid_lens.astype(jnp.int32)
    else:
        # TODO(synk): 2-D per-query valid_lens variant of masked_softmax.
        raise NotImplementedError("only 1-D valid_lens is supported")

    if tk_tile is None:
        tk_tile = _choose_tk_tile(Tk)
    assert Tk % tk_tile == 0, "Tk must be divisible by tk_tile"
    n_tk = Tk // tk_tile

    # bf16 operands for every MXU matmul; f32 accumulation happens in-kernel.
    cdt = jnp.bfloat16
    q_in = queries.astype(cdt)
    k_in = keys.astype(cdt)
    v_in = values.astype(cdt)
    # Per-head weight slabs so the kernel never lane-slices dh-wide pieces:
    #   Wq[:, h*dh:(h+1)*dh] -> wq_h[h],   Wo[h*dh:(h+1)*dh, :] -> wo_h[h]
    wq_h = jnp.transpose(Wq.reshape(Dq, num_heads, dh), (1, 0, 2)).astype(cdt)
    wk_h = jnp.transpose(Wk.reshape(Dk, num_heads, dh), (1, 0, 2)).astype(cdt)
    wv_h = jnp.transpose(Wv.reshape(Dv, num_heads, dh), (1, 0, 2)).astype(cdt)
    wo_h = Wo.reshape(num_heads, dh, nh).astype(cdt)

    out_dtype = queries.dtype

    # Explicit scoped-VMEM budget: 2x (double-buffered) blocks + scratch + headroom.
    block_bytes = (
        _block_vmem_bytes((Tq, Dq), cdt)
        + _block_vmem_bytes((tk_tile, Dk), cdt)
        + _block_vmem_bytes((tk_tile, Dv), cdt)
        + _block_vmem_bytes((Dq, dh), cdt)
        + _block_vmem_bytes((Dk, dh), cdt)
        + _block_vmem_bytes((Dv, dh), cdt)
        + _block_vmem_bytes((dh, nh), cdt)
        + _block_vmem_bytes((Tq, nh), out_dtype))
    scratch_bytes = (
        _block_vmem_bytes((Tq, dh), cdt)
        + 2 * _block_vmem_bytes((Tq, 1), jnp.float32)
        + _block_vmem_bytes((Tq, dh), jnp.float32)
        + _block_vmem_bytes((Tq, nh), jnp.float32))
    vmem_limit = int(min(64 * 2**20,                      # stay within v7x physical VMEM
                         max(8 * 2**20, 2 * block_bytes + scratch_bytes + 4 * 2**20)))

    flops = 2 * B * (Tq * Dq * nh + Tk * Dk * nh + Tk * Dv * nh
                     + 2 * num_heads * Tq * Tk * dh + Tq * nh * nh)
    bytes_accessed = int(2 * (q_in.size + num_heads * (k_in.size + v_in.size))
                         + 2 * (wq_h.size + wk_h.size + wv_h.size + wo_h.size)
                         + B * Tq * nh * jnp.dtype(out_dtype).itemsize)

    kernel = partial(_mha_kernel, tk_tile=tk_tile, scale=1.0 / math.sqrt(dh),
                     use_approx_reciprocal=use_approx_reciprocal)

    return pl.pallas_call(
        kernel,
        out_shape=jax.ShapeDtypeStruct((B, Tq, nh), out_dtype),
        grid_spec=pltpu.PrefetchScalarGridSpec(
            num_scalar_prefetch=1,
            grid=(B, num_heads, n_tk),
            in_specs=[
                # activations (Q block constant across h/t -> no re-DMA)
                pl.BlockSpec((1, Tq, Dq),      lambda b, h, t, vl: (b, 0, 0)),
                pl.BlockSpec((1, tk_tile, Dk), lambda b, h, t, vl: (b, t, 0)),
                pl.BlockSpec((1, tk_tile, Dv), lambda b, h, t, vl: (b, t, 0)),
                # per-head weight slabs
                pl.BlockSpec((1, Dq, dh), lambda b, h, t, vl: (h, 0, 0)),
                pl.BlockSpec((1, Dk, dh), lambda b, h, t, vl: (h, 0, 0)),
                pl.BlockSpec((1, Dv, dh), lambda b, h, t, vl: (h, 0, 0)),
                pl.BlockSpec((1, dh, nh), lambda b, h, t, vl: (h, 0, 0)),
            ],
            out_specs=pl.BlockSpec((1, Tq, nh), lambda b, h, t, vl: (b, 0, 0)),
            scratch_shapes=[
                pltpu.VMEM((Tq, dh), cdt),          # q_scr: scaled per-head Q
                pltpu.VMEM((Tq, 1), jnp.float32),   # m: online-softmax running max
                pltpu.VMEM((Tq, 1), jnp.float32),   # l: online-softmax denominator
                pltpu.VMEM((Tq, dh), jnp.float32),  # acc: per-head output accumulator
                pltpu.VMEM((Tq, nh), jnp.float32),  # y: cross-head (W_o-folded) accum
            ],
        ),
        compiler_params=pltpu.CompilerParams(
            dimension_semantics=("parallel", "arbitrary", "arbitrary"),
            vmem_limit_bytes=vmem_limit,
        ),
        cost_estimate=pl.CostEstimate(
            flops=flops,
            transcendentals=B * num_heads * Tq * (Tk + n_tk),
            bytes_accessed=bytes_accessed,
        ),
    )(vl, q_in, k_in, v_in, wq_h, wk_h, wv_h, wo_h)


# ---------------------------------------------------------------------------
# Pure-JAX f32 reference (mirrors the PyTorch module) for the sanity check.
# ---------------------------------------------------------------------------
def _transpose_qkv(x, num_heads):
    B, T, D = x.shape
    x = x.reshape(B, T, num_heads, D // num_heads)
    x = jnp.transpose(x, (0, 2, 1, 3))
    return x.reshape(B * num_heads, T, D // num_heads)


def _transpose_output(x, num_heads):
    BH, T, dh = x.shape
    B = BH // num_heads
    x = x.reshape(B, num_heads, T, dh)
    x = jnp.transpose(x, (0, 2, 1, 3))
    return x.reshape(B, T, num_heads * dh)


def _reference(queries, keys, values, valid_lens, params, num_heads):
    Wq, Wk, Wv, Wo = params["Wq"], params["Wk"], params["Wv"], params["Wo"]
    q = _transpose_qkv(queries @ Wq, num_heads)
    k = _transpose_qkv(keys @ Wk, num_heads)
    v = _transpose_qkv(values @ Wv, num_heads)
    d = q.shape[-1]
    scores = jnp.einsum("bqd,bkd->bqk", q, k) / math.sqrt(d)
    if valid_lens is not None:
        vl = jnp.repeat(valid_lens.astype(jnp.int32), num_heads, axis=0)
        col = jnp.arange(scores.shape[-1])[None, None, :]
        scores = jnp.where(col < vl[:, None, None], scores, _MASK_VALUE)
    p = jax.nn.softmax(scores, axis=-1)
    out = jnp.einsum("bqk,bkd->bqd", p, v)
    return _transpose_output(out, num_heads) @ Wo


if __name__ == "__main__":
    # Small shapes consistent with the module (Tk=16 with tk_tile=8 exercises the
    # multi-tile online-softmax path; valid_len=3 fully masks the second key tile).
    B, Tq, Tk = 2, 8, 16
    query_size = key_size = value_size = 16
    num_hiddens, num_heads = 32, 4

    key = jax.random.PRNGKey(0)
    kq, kk, kv, kwq, kwk, kwv, kwo = jax.random.split(key, 7)

    queries = jax.random.normal(kq, (B, Tq, query_size), dtype=jnp.float32)
    keys = jax.random.normal(kk, (B, Tk, key_size), dtype=jnp.float32)
    values = jax.random.normal(kv, (B, Tk, value_size), dtype=jnp.float32)
    valid_lens = jnp.array([3, 11], dtype=jnp.int32)

    # Deterministic synthetic parameters (nn.Linear with bias=False).
    scale = 0.1
    params = {
        "Wq": scale * jax.random.normal(kwq, (query_size, num_hiddens), jnp.float32),
        "Wk": scale * jax.random.normal(kwk, (key_size, num_hiddens), jnp.float32),
        "Wv": scale * jax.random.normal(kwv, (value_size, num_hiddens), jnp.float32),
        "Wo": scale * jax.random.normal(kwo, (num_hiddens, num_hiddens), jnp.float32),
    }

    out = multi_head_attention(queries, keys, values, valid_lens, params, num_heads,
                               tk_tile=8)
    out = jax.block_until_ready(out)

    ref = _reference(queries, keys, values, valid_lens, params, num_heads)
    assert out.shape == (B, Tq, num_hiddens)
    # Tolerance reflects deliberate bf16 MXU operands (f32 accumulation); structural
    # bugs (wrong mask / head mapping) produce errors orders of magnitude larger.
    assert jnp.allclose(out, ref, atol=2e-2, rtol=2e-2)

    print("KERNEL_OK")
</pallas_src>

<mosaic_0001>
module attributes {stable_mosaic.version = 11 : i64} {
  func.func @_mha_kernel(%arg0: i32, %arg1: i32, %arg2: i32, %arg3: memref<2xi32, #tpu.memory_space<smem>>, %arg4: memref<1x8x16xbf16, #tpu.memory_space<vmem>>, %arg5: memref<1x8x16xbf16, #tpu.memory_space<vmem>>, %arg6: memref<1x8x16xbf16, #tpu.memory_space<vmem>>, %arg7: memref<1x16x8xbf16, #tpu.memory_space<vmem>>, %arg8: memref<1x16x8xbf16, #tpu.memory_space<vmem>>, %arg9: memref<1x16x8xbf16, #tpu.memory_space<vmem>>, %arg10: memref<1x8x32xbf16, #tpu.memory_space<vmem>>, %arg11: memref<1x8x32xf32, #tpu.memory_space<vmem>>, %arg12: memref<8x8xbf16, #tpu.memory_space<vmem>>, %arg13: memref<8x1xf32, #tpu.memory_space<vmem>>, %arg14: memref<8x1xf32, #tpu.memory_space<vmem>>, %arg15: memref<8x8xf32, #tpu.memory_space<vmem>>, %arg16: memref<8x32xf32, #tpu.memory_space<vmem>>) attributes {dimension_semantics = [#tpu.dimension_semantics<parallel>, #tpu.dimension_semantics<arbitrary>, #tpu.dimension_semantics<arbitrary>], iteration_bounds = array<i64: 2, 4, 2>, scalar_prefetch = 1 : i64, scratch_operands = 5 : i64, tpu.core_type = #tpu.core_type<tc>, window_params = [{transform_indices = @transform_0, window_bounds = array<i64: 1, 8, 16>}, {transform_indices = @transform_1, window_bounds = array<i64: 1, 8, 16>}, {transform_indices = @transform_2, window_bounds = array<i64: 1, 8, 16>}, {transform_indices = @transform_3, window_bounds = array<i64: 1, 16, 8>}, {transform_indices = @transform_4, window_bounds = array<i64: 1, 16, 8>}, {transform_indices = @transform_5, window_bounds = array<i64: 1, 16, 8>}, {transform_indices = @transform_6, window_bounds = array<i64: 1, 8, 32>}, {transform_indices = @transform_7, window_bounds = array<i64: 1, 8, 32>}]} {
    %c0_i32 = arith.constant 0 : i32
    %0 = arith.cmpi eq, %arg1, %c0_i32 : i32
    %c0_i32_0 = arith.constant 0 : i32
    %1 = arith.cmpi eq, %arg2, %c0_i32_0 : i32
    %2 = arith.andi %0, %1 : i1
    %3 = arith.extui %2 : i1 to i32
    %c0_i32_1 = arith.constant 0 : i32
    %4 = arith.cmpi ne, %3, %c0_i32_1 : i32
    scf.if %4 {
      %cst_38 = arith.constant 0.000000e+00 : f32
      %65 = vector.broadcast %cst_38 : f32 to vector<8x32xf32>
      %c0_39 = arith.constant 0 : index
      %c0_40 = arith.constant 0 : index
      %66 = vector.load %arg16[%c0_39, %c0_40] : memref<8x32xf32, #tpu.memory_space<vmem>>, vector<8x32xf32>
      tpu.vector_store %arg16[%c0_39, %c0_40], %65 {strides = array<i32>} : memref<8x32xf32, #tpu.memory_space<vmem>>, vector<8x32xf32>,
    } else {
    }
    %c0_i32_2 = arith.constant 0 : i32
    %5 = arith.cmpi eq, %arg2, %c0_i32_2 : i32
    %6 = arith.extui %5 : i1 to i32
    %c0_i32_3 = arith.constant 0 : i32
    %7 = arith.cmpi ne, %6, %c0_i32_3 : i32
    scf.if %7 {
      %cst_38 = arith.constant 0xFF800000 : f32
      %65 = vector.broadcast %cst_38 : f32 to vector<8x1xf32>
      %c0_39 = arith.constant 0 : index
      %c0_40 = arith.constant 0 : index
      %66 = vector.load %arg13[%c0_39, %c0_40] : memref<8x1xf32, #tpu.memory_space<vmem>>, vector<8x1xf32>
      tpu.vector_store %arg13[%c0_39, %c0_40], %65 {strides = array<i32>} : memref<8x1xf32, #tpu.memory_space<vmem>>, vector<8x1xf32>,
      %cst_41 = arith.constant 0.000000e+00 : f32
      %67 = vector.broadcast %cst_41 : f32 to vector<8x1xf32>
      %c0_42 = arith.constant 0 : index
      %c0_43 = arith.constant 0 : index
      %68 = vector.load %arg14[%c0_42, %c0_43] : memref<8x1xf32, #tpu.memory_space<vmem>>, vector<8x1xf32>
      tpu.vector_store %arg14[%c0_42, %c0_43], %67 {strides = array<i32>} : memref<8x1xf32, #tpu.memory_space<vmem>>, vector<8x1xf32>,
      %cst_44 = arith.constant 0.000000e+00 : f32
      %69 = vector.broadcast %cst_44 : f32 to vector<8x8xf32>
      %c0_45 = arith.constant 0 : index
      %c0_46 = arith.constant 0 : index
      %70 = vector.load %arg15[%c0_45, %c0_46] : memref<8x8xf32, #tpu.memory_space<vmem>>, vector<8x8xf32>
      tpu.vector_store %arg15[%c0_45, %c0_46], %69 {strides = array<i32>} : memref<8x8xf32, #tpu.memory_space<vmem>>, vector<8x8xf32>,
      %c0_47 = arith.constant 0 : index
      %c0_48 = arith.constant 0 : index
      %c0_49 = arith.constant 0 : index
      %71 = vector.load %arg4[%c0_47, %c0_48, %c0_49] : memref<1x8x16xbf16, #tpu.memory_space<vmem>>, vector<1x8x16xbf16>
      %72 = vector.shape_cast %71 : vector<1x8x16xbf16> to vector<8x16xbf16>
      %c0_50 = arith.constant 0 : index
      %c0_51 = arith.constant 0 : index
      %c0_52 = arith.constant 0 : index
      %73 = vector.load %arg7[%c0_50, %c0_51, %c0_52] : memref<1x16x8xbf16, #tpu.memory_space<vmem>>, vector<1x16x8xbf16>
      %74 = vector.shape_cast %73 : vector<1x16x8xbf16> to vector<16x8xbf16>
      %cst_53 = arith.constant dense<0.000000e+00> : vector<8x8xf32>
      %75 = tpu.matmul %72, %74, %cst_53 {dimension_numbers = #tpu.dot_dimension_numbers<[1], [0], [0], [1], [0, 0, 1, 1], [], []>} : vector<8x16xbf16>, vector<16x8xbf16>, vector<8x8xf32> -> vector<8x8xf32>
      %cst_54 = arith.constant 0.353553385 : f32
      %76 = vector.broadcast %cst_54 : f32 to vector<8x8xf32>
      %77 = arith.mulf %75, %76 : vector<8x8xf32>
      %78 = arith.truncf %77 : vector<8x8xf32> to vector<8x8xbf16>
      %c0_55 = arith.constant 0 : index
      %c0_56 = arith.constant 0 : index
      %79 = vector.load %arg12[%c0_55, %c0_56] : memref<8x8xbf16, #tpu.memory_space<vmem>>, vector<8x8xbf16>
      tpu.vector_store %arg12[%c0_55, %c0_56], %78 {strides = array<i32>} : memref<8x8xbf16, #tpu.memory_space<vmem>>, vector<8x8xbf16>,
    } else {
    }
    %c0 = arith.constant 0 : index
    %c0_4 = arith.constant 0 : index
    %c0_5 = arith.constant 0 : index
    %8 = vector.load %arg5[%c0, %c0_4, %c0_5] : memref<1x8x16xbf16, #tpu.memory_space<vmem>>, vector<1x8x16xbf16>
    %9 = vector.shape_cast %8 : vector<1x8x16xbf16> to vector<8x16xbf16>
    %c0_6 = arith.constant 0 : index
    %c0_7 = arith.constant 0 : index
    %c0_8 = arith.constant 0 : index
    %10 = vector.load %arg8[%c0_6, %c0_7, %c0_8] : memref<1x16x8xbf16, #tpu.memory_space<vmem>>, vector<1x16x8xbf16>
    %11 = vector.shape_cast %10 : vector<1x16x8xbf16> to vector<16x8xbf16>
    %cst = arith.constant dense<0.000000e+00> : vector<8x8xf32>
    %12 = tpu.matmul %9, %11, %cst {dimension_numbers = #tpu.dot_dimension_numbers<[1], [0], [0], [1], [0, 0, 1, 1], [], []>} : vector<8x16xbf16>, vector<16x8xbf16>, vector<8x8xf32> -> vector<8x8xf32>
    %c0_9 = arith.constant 0 : index
    %c0_10 = arith.constant 0 : index
    %c0_11 = arith.constant 0 : index
    %13 = vector.load %arg6[%c0_9, %c0_10, %c0_11] : memref<1x8x16xbf16, #tpu.memory_space<vmem>>, vector<1x8x16xbf16>
    %14 = vector.shape_cast %13 : vector<1x8x16xbf16> to vector<8x16xbf16>
    %c0_12 = arith.constant 0 : index
    %c0_13 = arith.constant 0 : index
    %c0_14 = arith.constant 0 : index
    %15 = vector.load %arg9[%c0_12, %c0_13, %c0_14] : memref<1x16x8xbf16, #tpu.memory_space<vmem>>, vector<1x16x8xbf16>
    %16 = vector.shape_cast %15 : vector<1x16x8xbf16> to vector<16x8xbf16>
    %cst_15 = arith.constant dense<0.000000e+00> : vector<8x8xf32>
    %17 = tpu.matmul %14, %16, %cst_15 {dimension_numbers = #tpu.dot_dimension_numbers<[1], [0], [0], [1], [0, 0, 1, 1], [], []>} : vector<8x16xbf16>, vector<16x8xbf16>, vector<8x8xf32> -> vector<8x8xf32>
    %c0_16 = arith.constant 0 : index
    %c0_17 = arith.constant 0 : index
    %18 = vector.load %arg12[%c0_16, %c0_17] : memref<8x8xbf16, #tpu.memory_space<vmem>>, vector<8x8xbf16>
    %19 = arith.truncf %12 : vector<8x8xf32> to vector<8x8xbf16>
    %cst_18 = arith.constant dense<0.000000e+00> : vector<8x8xf32>
    %20 = tpu.matmul %18, %19, %cst_18 {dimension_numbers = #tpu.dot_dimension_numbers<[1], [1], [0], [0], [0, 0, 1, 0], [], []>} : vector<8x8xbf16>, vector<8x8xbf16>, vector<8x8xf32> -> vector<8x8xf32>
    %21 = arith.index_cast %arg0 : i32 to index
    %22 = memref.load %arg3[%21] : memref<2xi32, #tpu.memory_space<smem>>
    %23 = tpu.iota {dimensions = array<i32: 1>} : vector<1x8xi32>
    %c8_i32 = arith.constant 8 : i32
    %24 = arith.muli %arg2, %c8_i32 : i32
    %25 = vector.broadcast %24 : i32 to vector<1x8xi32>
    %26 = arith.addi %23, %25 : vector<1x8xi32>
    %27 = vector.broadcast %22 : i32 to vector<1x8xi32>
    %28 = arith.cmpi slt, %26, %27 : vector<1x8xi32>
    %cst_19 = arith.constant -1.000000e+06 : f32
    %29 = vector.shape_cast %28 : vector<1x8xi1> to vector<1x8xi1>
    %30 = vector.broadcast %29 : vector<1x8xi1> to vector<8x8xi1>
    %31 = vector.broadcast %cst_19 : f32 to vector<8x8xf32>
    %32 = arith.select %30, %20, %31 : vector<8x8xi1>, vector<8x8xf32>
    %c0_20 = arith.constant 0 : index
    %c0_21 = arith.constant 0 : index
    %33 = vector.load %arg13[%c0_20, %c0_21] : memref<8x1xf32, #tpu.memory_space<vmem>>, vector<8x1xf32>
    %cst_22 = arith.constant dense<0xFF800000> : vector<8xf32>
    %34 = vector.multi_reduction <maximumf>, %32, %cst_22 [1] : vector<8x8xf32> to vector<8xf32>
    %35 = vector.shape_cast %34 : vector<8xf32> to vector<8x1xf32>
    %36 = arith.maximumf %33, %35 : vector<8x1xf32>
    %37 = arith.subf %33, %36 : vector<8x1xf32>
    %38 = math.exp %37 : vector<8x1xf32>
    %39 = vector.broadcast %36 : vector<8x1xf32> to vector<8x8xf32>
    %40 = arith.subf %32, %39 : vector<8x8xf32>
    %41 = math.exp %40 : vector<8x8xf32>
    %c0_23 = arith.constant 0 : index
    %c0_24 = arith.constant 0 : index
    %42 = vector.load %arg14[%c0_23, %c0_24] : memref<8x1xf32, #tpu.memory_space<vmem>>, vector<8x1xf32>
    %43 = arith.mulf %38, %42 : vector<8x1xf32>
    %cst_25 = arith.constant dense<0.000000e+00> : vector<8xf32>
    %44 = vector.multi_reduction <add>, %41, %cst_25 [1] : vector<8x8xf32> to vector<8xf32>
    %45 = vector.shape_cast %44 : vector<8xf32> to vector<8x1xf32>
    %46 = arith.addf %43, %45 : vector<8x1xf32>
    %c0_26 = arith.constant 0 : index
    %c0_27 = arith.constant 0 : index
    %47 = vector.load %arg14[%c0_26, %c0_27] : memref<8x1xf32, #tpu.memory_space<vmem>>, vector<8x1xf32>
    tpu.vector_store %arg14[%c0_26, %c0_27], %46 {strides = array<i32>} : memref<8x1xf32, #tpu.memory_space<vmem>>, vector<8x1xf32>,
    %c0_28 = arith.constant 0 : index
    %c0_29 = arith.constant 0 : index
    %48 = vector.load %arg15[%c0_28, %c0_29] : memref<8x8xf32, #tpu.memory_space<vmem>>, vector<8x8xf32>
    %49 = vector.broadcast %38 : vector<8x1xf32> to vector<8x8xf32>
    %50 = arith.mulf %49, %48 : vector<8x8xf32>
    %51 = arith.truncf %41 : vector<8x8xf32> to vector<8x8xbf16>
    %52 = arith.truncf %17 : vector<8x8xf32> to vector<8x8xbf16>
    %cst_30 = arith.constant dense<0.000000e+00> : vector<8x8xf32>
    %53 = tpu.matmul %51, %52, %cst_30 {dimension_numbers = #tpu.dot_dimension_numbers<[1], [0], [0], [1], [0, 0, 1, 1], [], []>} : vector<8x8xbf16>, vector<8x8xbf16>, vector<8x8xf32> -> vector<8x8xf32>
    %54 = arith.addf %50, %53 : vector<8x8xf32>
    %c0_31 = arith.constant 0 : index
    %c0_32 = arith.constant 0 : index
    %55 = vector.load %arg15[%c0_31, %c0_32] : memref<8x8xf32, #tpu.memory_space<vmem>>, vector<8x8xf32>
    tpu.vector_store %arg15[%c0_31, %c0_32], %54 {strides = array<i32>} : memref<8x8xf32, #tpu.memory_space<vmem>>, vector<8x8xf32>,
    %c0_33 = arith.constant 0 : index
    %c0_34 = arith.constant 0 : index
    %56 = vector.load %arg13[%c0_33, %c0_34] : memref<8x1xf32, #tpu.memory_space<vmem>>, vector<8x1xf32>
    tpu.vector_store %arg13[%c0_33, %c0_34], %36 {strides = array<i32>} : memref<8x1xf32, #tpu.memory_space<vmem>>, vector<8x1xf32>,
    %c1_i32 = arith.constant 1 : i32
    %57 = arith.cmpi eq, %arg2, %c1_i32 : i32
    %58 = arith.extui %57 : i1 to i32
    %c0_i32_35 = arith.constant 0 : i32
    %59 = arith.cmpi ne, %58, %c0_i32_35 : i32
    scf.if %59 {
      %c0_38 = arith.constant 0 : index
      %c0_39 = arith.constant 0 : index
      %65 = vector.load %arg15[%c0_38, %c0_39] : memref<8x8xf32, #tpu.memory_space<vmem>>, vector<8x8xf32>
      %c0_40 = arith.constant 0 : index
      %c0_41 = arith.constant 0 : index
      %66 = vector.load %arg14[%c0_40, %c0_41] : memref<8x1xf32, #tpu.memory_space<vmem>>, vector<8x1xf32>
      %67 = vector.broadcast %66 : vector<8x1xf32> to vector<8x8xf32>
      %68 = arith.divf %65, %67 : vector<8x8xf32>
      %c0_42 = arith.constant 0 : index
      %c0_43 = arith.constant 0 : index
      %69 = vector.load %arg16[%c0_42, %c0_43] : memref<8x32xf32, #tpu.memory_space<vmem>>, vector<8x32xf32>
      %70 = arith.truncf %68 : vector<8x8xf32> to vector<8x8xbf16>
      %c0_44 = arith.constant 0 : index
      %c0_45 = arith.constant 0 : index
      %c0_46 = arith.constant 0 : index
      %71 = vector.load %arg10[%c0_44, %c0_45, %c0_46] : memref<1x8x32xbf16, #tpu.memory_space<vmem>>, vector<1x8x32xbf16>
      %72 = vector.shape_cast %71 : vector<1x8x32xbf16> to vector<8x32xbf16>
      %cst_47 = arith.constant dense<0.000000e+00> : vector<8x32xf32>
      %73 = tpu.matmul %70, %72, %cst_47 {dimension_numbers = #tpu.dot_dimension_numbers<[1], [0], [0], [1], [0, 0, 1, 1], [], []>} : vector<8x8xbf16>, vector<8x32xbf16>, vector<8x32xf32> -> vector<8x32xf32>
      %74 = arith.addf %69, %73 : vector<8x32xf32>
      %c0_48 = arith.constant 0 : index
      %c0_49 = arith.constant 0 : index
      %75 = vector.load %arg16[%c0_48, %c0_49] : memref<8x32xf32, #tpu.memory_space<vmem>>, vector<8x32xf32>
      tpu.vector_store %arg16[%c0_48, %c0_49], %74 {strides = array<i32>} : memref<8x32xf32, #tpu.memory_space<vmem>>, vector<8x32xf32>,
    } else {
    }
    %c3_i32 = arith.constant 3 : i32
    %60 = arith.cmpi eq, %arg1, %c3_i32 : i32
    %c1_i32_36 = arith.constant 1 : i32
    %61 = arith.cmpi eq, %arg2, %c1_i32_36 : i32
    %62 = arith.andi %60, %61 : i1
    %63 = arith.extui %62 : i1 to i32
    %c0_i32_37 = arith.constant 0 : i32
    %64 = arith.cmpi ne, %63, %c0_i32_37 : i32
    scf.if %64 {
      %c0_38 = arith.constant 0 : index
      %c0_39 = arith.constant 0 : index
      %65 = vector.load %arg16[%c0_38, %c0_39] : memref<8x32xf32, #tpu.memory_space<vmem>>, vector<8x32xf32>
      %c0_40 = arith.constant 0 : index
      %c0_41 = arith.constant 0 : index
      %c0_42 = arith.constant 0 : index
      %66 = vector.load %arg11[%c0_40, %c0_41, %c0_42] : memref<1x8x32xf32, #tpu.memory_space<vmem>>, vector<1x8x32xf32>
      %67 = vector.shape_cast %66 : vector<1x8x32xf32> to vector<8x32xf32>
      %68 = vector.shape_cast %65 : vector<8x32xf32> to vector<1x8x32xf32>
      tpu.vector_store %arg11[%c0_40, %c0_41, %c0_42], %68 {strides = array<i32>} : memref<1x8x32xf32, #tpu.memory_space<vmem>>, vector<1x8x32xf32>,
    } else {
    }
    return
  }
  func.func @transform_0(%arg0: i32, %arg1: i32, %arg2: i32, %arg3: memref<2xi32, #tpu.memory_space<smem>>) -> (i32, i32, i32) {
    %c0_i32 = arith.constant 0 : i32
    %c0_i32_0 = arith.constant 0 : i32
    %c0_i32_1 = arith.constant 0 : i32
    return %arg0, %c0_i32, %c0_i32_0 : i32, i32, i32
  }
  func.func @transform_1(%arg0: i32, %arg1: i32, %arg2: i32, %arg3: memref<2xi32, #tpu.memory_space<smem>>) -> (i32, i32, i32) {
    %c0_i32 = arith.constant 0 : i32
    %c0_i32_0 = arith.constant 0 : i32
    return %arg0, %arg2, %c0_i32 : i32, i32, i32
  }
  func.func @transform_2(%arg0: i32, %arg1: i32, %arg2: i32, %arg3: memref<2xi32, #tpu.memory_space<smem>>) -> (i32, i32, i32) {
    %c0_i32 = arith.constant 0 : i32
    %c0_i32_0 = arith.constant 0 : i32
    return %arg0, %arg2, %c0_i32 : i32, i32, i32
  }
  func.func @transform_3(%arg0: i32, %arg1: i32, %arg2: i32, %arg3: memref<2xi32, #tpu.memory_space<smem>>) -> (i32, i32, i32) {
    %c0_i32 = arith.constant 0 : i32
    %c0_i32_0 = arith.constant 0 : i32
    %c0_i32_1 = arith.constant 0 : i32
    return %arg1, %c0_i32, %c0_i32_0 : i32, i32, i32
  }
  func.func @transform_4(%arg0: i32, %arg1: i32, %arg2: i32, %arg3: memref<2xi32, #tpu.memory_space<smem>>) -> (i32, i32, i32) {
    %c0_i32 = arith.constant 0 : i32
    %c0_i32_0 = arith.constant 0 : i32
    %c0_i32_1 = arith.constant 0 : i32
    return %arg1, %c0_i32, %c0_i32_0 : i32, i32, i32
  }
  func.func @transform_5(%arg0: i32, %arg1: i32, %arg2: i32, %arg3: memref<2xi32, #tpu.memory_space<smem>>) -> (i32, i32, i32) {
    %c0_i32 = arith.constant 0 : i32
    %c0_i32_0 = arith.constant 0 : i32
    %c0_i32_1 = arith.constant 0 : i32
    return %arg1, %c0_i32, %c0_i32_0 : i32, i32, i32
  }
  func.func @transform_6(%arg0: i32, %arg1: i32, %arg2: i32, %arg3: memref<2xi32, #tpu.memory_space<smem>>) -> (i32, i32, i32) {
    %c0_i32 = arith.constant 0 : i32
    %c0_i32_0 = arith.constant 0 : i32
    %c0_i32_1 = arith.constant 0 : i32
    return %arg1, %c0_i32, %c0_i32_0 : i32, i32, i32
  }
  func.func @transform_7(%arg0: i32, %arg1: i32, %arg2: i32, %arg3: memref<2xi32, #tpu.memory_space<smem>>) -> (i32, i32, i32) {
    %c0_i32 = arith.constant 0 : i32
    %c0_i32_0 = arith.constant 0 : i32
    %c0_i32_1 = arith.constant 0 : i32
    return %arg0, %c0_i32, %c0_i32_0 : i32, i32, i32
  }
}

</mosaic_0001>

<bundles_post_ra>
// kernel: tpu_custom_call.1
= control target key start
LH: loop header
LB: loop body
LE: loop exit
PB: predicated region body
PF: predicated region fallthrough
CT: control target
= control target key end

     0   :  { %s1622_s0 = inlined_call_operand.vmem [shape: s32[2], index: 0, kind: input, shape index: {}]   ;;  %s1623_s1 = inlined_call_operand.vmem [shape: bf16[2,8,16], index: 1, kind: input, shape index: {}]   ;;  %s1624_s2 = inlined_call_operand.vmem [shape: bf16[2,16,16], index: 2, kind: input, shape index: {}]   ;;  %s1625_s3 = inlined_call_operand.vmem [shape: bf16[2,16,16], index: 3, kind: input, shape index: {}]   ;;  %s1626_s4 = inlined_call_operand.vmem [shape: bf16[4,16,8], index: 4, kind: input, shape index: {}]   ;;  %s1627_s5 = inlined_call_operand.vmem [shape: bf16[4,16,8], index: 5, kind: input, shape index: {}]   ;;  %s1628_s6 = inlined_call_operand.vmem [shape: bf16[4,16,8], index: 6, kind: input, shape index: {}]   ;;  %s1629_s7 = inlined_call_operand.vmem [shape: bf16[4,8,32], index: 7, kind: input, shape index: {}]   ;;  %s1630_s8 = inlined_call_operand.hbm [shape: f32[2,8,32], index: 8, kind: output, shape index: {}]  }
   0x1   :  { %1639 = sst [smem:[#allocation23_spill]] %s1623_s1  ;;  %s13_s29 = sshll.u32 %s1622_s0, 4  ;;  %s14_s29 = int_to_ptr.vmem [resolvable:$true] %s13_s29 }
   0x2   :  { %1640 = sst [smem:[#allocation24_spill]] %s1624_s2  ;;  %s1203_s30 = scalar_lea.vmem %s14_s29, 16 }
   0x3   :  { %1641 = sst [smem:[#allocation25_spill]] %s1625_s3  ;;  %p1204_p0 = scmp.ne.s32.totalorder %s14_s29, %s1203_s30 }
   0x4   :  { %p1208_p1 = scmp.lt.s32.totalorder %s14_s29, %s14_s29  ;;  %p1209_p2 = scmp.lt.s32.totalorder %s1203_s30, %s1203_s30 }
   0x6   :  { %p1210_p3 = por %p1209_p2, %p1208_p1 }
   0x8   :  { %p1211_p4 = pnand %p1210_p3, %p1204_p0 }
   0xa   :  { %1214 = shalt.err (!%p1211_p4)  }
   0xb   :  { %s1329_s9 = smov [#allocation8]  }
   0xc   :  { %16 = dma.vmem_to_smem %s14_s29, 16, %s1329_s9, [#allocation7] }
   0xd   :  { %1283 = dma.done.wait [#allocation7], 16 }
   0xe   :  { %1284 = vsyncadd [#allocation7], 4294967280 }
   0xf   :  { %18 = sfence }
  0x10   :  { %19 = vsyncpa [#allocation10], 0 }
  0x11   :  { %21 = vsyncpa [#allocation10 + $0x1], 0  ;;  %s1389_s10 = smov 0   ;;  %s1391_s11 = smov 0  }
  0x12   :  { %s1393_s0 = smov 0   ;;  %s1395_s12 = smov 0  }
  0x13   :  { %s1397_s13 = smov 0   ;;  %s1399_s14 = smov 0  }
  0x14   :  { %s1401_s15 = smov 0   ;;  %s1403_s16 = smov 0  }
  0x15   :  { %s1405_s17 = smov 0   ;;  %s1407_s18 = smov 0  }
  0x16 LB: > { %1642 = sst [smem:[#allocation13_spill]] %s1291_s10  ;;  %s1008_s19 = sadd.s32 4294967295, %s1327_s18   ;;  %s1327_s18 = sphi %s1407_s18, %s27_s18   ;;  %s1323_s17 = sphi %s1405_s17, %s1667_s17   ;;  %s1319_s16 = sphi %s1403_s16, %s1666_s16   ;;  %s1315_s15 = sphi %s1401_s15, %s1665_s15   ;;  %s1311_s14 = sphi %s1399_s14, %s1664_s14   ;;  %s1307_s13 = sphi %s1397_s13, %s1663_s13   ;;  %s1303_s12 = sphi %s1395_s12, %s1662_s12   ;;  %s1299_s0 = sphi %s1393_s0, %s1661_s0   ;;  %s1295_s11 = sphi %s1391_s11, %s1669_s11   ;;  %s1291_s10 = sphi %s1389_s10, %s1668_s10  }
  0x17   : > { %1643 = sst [smem:[#allocation14_spill]] %s1299_s0  ;;  %s1009_s20 = sadd.s32 4294967294, %s1327_s18  }
  0x18   : > { %1644 = sst [smem:[#allocation15_spill]] %s1315_s15  ;;  %s39_s21 = sadd.s32 1, %s1315_s15 }
  0x19   : > { %1645 = sst [smem:[#allocation16_spill]] %s1319_s16  ;;  %p40_p5 = scmp.ge.s32.totalorder %s39_s21, 2 }
  0x1a   : > { %1646 = sst [smem:[#allocation17_spill]] %s1323_s17  ;;  %s42_s22 = sadd.s32 1, %s1319_s16 }
  0x1b   : > { %s46_s23 = sadd.s32 1, %s1323_s17  ;;  %p249_p6 = scmp.ne.s32.totalorder %s1299_s0, %s1295_s11 }
  0x1c   : > { %s1671_s21 = smov (%p40_p5, %s39_s21), 0  ;;  %s1673_s22 = smov (!%p40_p5, %s42_s22), %s1319_s16 }
  0x1d   : > { %1647 = sst [smem:[#allocation18_spill]] %s1671_s21  ;;  %p250_p7 = scmp.eq.s32.totalorder %s1008_s19, 15 }
  0x1e   : > { %p255_p8 = scmp.ne.s32.totalorder %s1295_s11, %s1291_s10  ;;  %p44_p9 = scmp.ge.s32.totalorder %s1673_s22, 4 }
  0x1f   : > { %p256_p10 = scmp.eq.s32.totalorder %s1009_s20, 15  ;;  %p1451_p11 = por %p250_p7, %p249_p6 }
  0x20   : > { %p1012_p12 = scmp.ge.s32.totalorder %s1327_s18, 1  ;;  %s1675_s22 = smov (%p44_p9, %s1673_s22), 0 }
  0x21   : > { %1649 = sst [smem:[#allocation19_spill]] %s1675_s22  ;;  %s1677_s23 = smov (!%p44_p9, %s46_s23), %s1323_s17 }
  0x22   : > { %p1459_p13 = por %p256_p10, %p255_p8  ;;  %p334_p0 = scmp.lt.s32.totalorder %s1327_s18, 17 }
  0x23   : > { %p48_p1 = scmp.ge.s32.totalorder %s1677_s23, 2  ;;  %s239_s27 = sadd.s32 1, %s1299_s0 }
  0x24   : > { %s1650_s25 = scalar_select %p1459_p13, 1, 0 }
  0x25   : > { %p335_p2 = pnand %p1012_p12, %p334_p0  ;;  %s1679_s23 = smov (%p48_p1, %s1677_s23), 0 }
  0x26   : > { %1651 = sst [smem:[#allocation20_spill]] %s1650_s25  ;;  %s236_s26 = ssub.s32 %s1323_s17, %s1679_s23 }
  0x27   : > { %1652 = sst [smem:[#allocation21_spill]] %s1679_s23  ;;  %p237_p3 = scmp.eq.s32.totalorder %s236_s26, 0 }
  0x28   : > { %338 = sbr.rel (%p335_p2) target bundleno = 1559 (0x617), region = 48  ;;  %s1635_s29 = sand.u32 (!%p335_p2), 1, %s1295_s11  }
  0x29   : > { %s1470_s28 = scalar_select %p237_p3, %s1299_s0, %s239_s27  }
  0x2a   : > { %p400_p4 = scmp.lt.s32.totalorder (!%p335_p2), %s1311_s14, 1  ;;  %s1476_s30 = sshll.u32 (!%p335_p2), %s1635_s29, 3 }
  0x2b   : > { %1653 = sst [smem:[#allocation22_spill]] %s1470_s28  ;;  %p406_p5 = scmp.lt.s32.totalorder (!%p335_p2), %s1303_s12, 1 }
  0x2c   : > { %p420_p6 = scmp.lt.s32.totalorder (!%p335_p2), %s1307_s13, 3  ;;  %s1654_s1 = sld [smem:[#allocation23_spill]] (!%p335_p2) }
  0x2d   : > { %s1655_s2 = sld [smem:[#allocation24_spill]] (!%p335_p2)  ;;  %s1656_s3 = sld [smem:[#allocation25_spill]] (!%p335_p2) }
  0x2e   : > { %p440_p7 = scmp.eq.s32.totalorder (!%p335_p2), %s1307_s13, 0  ;;  %p441_p8 = scmp.eq.s32.totalorder (!%p335_p2), %s1303_s12, 0 }
  0x2f   : > { %s401_s9 = scalar_select %p400_p4, %s1311_s14, 1 }
  0x30   : > { %s407_s19 = scalar_select %p406_p5, %s1303_s12, 1 }
  0x31   : > { %s1014_s20 = sshll.u32 %s401_s9, 2  ;;  %s1015_s26 = sshll.u32 %s401_s9, 1 }
  0x32   : > { %s1485_s22 = scalar_lea.vmem %s1654_s1, %s1014_s20  ;;  %s409_s21 = sadd.s32 %s1015_s26, %s407_s19 }
  0x33   : > { %s1016_s17 = sshll.u32 %s409_s21, 2  ;;  %p442_p9 = pnand %p441_p8, %p440_p7 }
  0x34   : > { %s1490_s28 = scalar_lea.vmem %s1655_s2, %s1016_s17  ;;  %s1495_s25 = scalar_lea.vmem %s1656_s3, %s1016_s17  ;;  %vm446_vm0 = vcmask (!%p442_p9), 261120   ;;  %v1330_v0 = vmov (!%p442_p9), 0.0  }
  0x35   : > { %s421_s10 = scalar_select %p420_p6, %s1307_s13, 3 }
  0x36   : > { %s399_s3 = scalar_lea.vmem [#allocation9], %s1476_s30  ;;  %445 = sbr.rel (%p442_p9) target bundleno = 61 (0x3d), region = 52  ;;  %447 = vst.msk [vmem:[#allocation6] sm:$0xff] (!%p442_p9), %vm446_vm0, %v1330_v0 }
  0x37   : > { %s1500_s9 = sshll.u32 %s421_s10, 3  ;;  %s1025_s23 = sshll.u32 %s421_s10, 2 }
  0x38   : > { %s424_s15 = scalar_lea.vmem %s1626_s4, %s1500_s9  ;;  %s429_s26 = scalar_lea.vmem %s1627_s5, %s1500_s9 }
  0x39   : > { %s434_s29 = scalar_lea.vmem %s1628_s6, %s1500_s9  ;;  %s1517_s2 = scalar_lea.vmem %s1629_s7, %s1025_s23 }
  0x3d PF: > { %p1026_p10 = scmp.ne.s32.totalorder %s1303_s12, 0 }
  0x3e   : > { %vm451_vm1 = vcmask (!%p1026_p10), 7168   ;;  %vm454_vm2 = vcmask (!%p1026_p10), 64512   ;;  %v1331_v1 = vmov (!%p1026_p10), -inf   ;;  %v1332_v2 = vmov (!%p1026_p10), 0.0   ;;  %v1191_v3 = vld [vmem:[%s424_s15] sm:$0xff] (!%p1026_p10)  }
  0x3f   : > { %450 = sbr.rel (%p1026_p10) target bundleno = 284 (0x11c), region = 56  ;;  %452 = vst.msk [vmem:[#allocation3] sm:$0xff] (!%p1026_p10), %vm451_vm1, %v1331_v1  ;;  %453 = vst.msk [vmem:[#allocation4] sm:$0xff] (!%p1026_p10), %vm451_vm1, %v1332_v2  ;;  %1057 = vmatprep.subr.bf16.mxu0 (!%p1026_p10), %v1332_v2  ;;  %vm1333_vm3 = vmmov (!%p1026_p10), 0   ;;  %v456_v4 = vld [vmem:[%s1485_s22] sm:$0xf] (!%p1026_p10) }
  0x40   : > { %455 = vst.msk [vmem:[#allocation5] sm:$0xff] (!%p1026_p10), %vm454_vm2, %v1332_v2  ;;  %1059 = vmatprep.mubr.msk.bf16.mxu0 (!%p1026_p10), %vm1333_vm3, %v1332_v2  ;;  %1058 = vmatpush3.bf16.msra.mxu0 (!%p1026_p10), %v1191_v3  ;;  %vm465_vm4 = vcmask (!%p1026_p10), 130048   ;;  %vm511_vm5 = vcmask (!%p1026_p10), 60416  }
  0x43   : > { %1060 = vmatmul.mubr.msk.bf16.vlgmr.msra.gmra.mrb[0].mxu0 (!%p1026_p10), %vm465_vm4, %v456_v4 }
 0x116   : > { %v503_v5 = vpop.f32.mrb[0].mxu0 }
 0x117   : > { %v509_v6 = vmul.f32 0.35355338, %v503_v5  ;;  %v1061_v7 = vpop.f32.mrb[1].mxu0 }
 0x118   : > { %v506_v8 = vpop.f32.mrb[2].mxu0 }
 0x119   : > { %v510_v9 = vpack.c.bf16 %v509_v6, %v509_v6  ;;  %v1062_v10 = vpop.f32.mrb[3].mxu0 }
 0x11b   : > { %512 = vst.msk [vmem:[#allocation2] sm:$0xf] %vm511_vm5, %v510_v9 }
 0x11c PF: > { %v1194_v11 = vld [vmem:[%s429_s26] sm:$0xff]   ;;  %v1334_v12 = vmov 0.0   ;;  %vm1335_vm6 = vmmov 0   ;;  %vm522_vm7 = vcmask 130048   ;;  %vm620_vm8 = vcmask 64512   ;;  %s667_s23 = sld [smem:[#allocation8 + %s1311_s14]] }
 0x11d   : > { %1063 = vmatprep.subr.bf16.mxu0 %v1334_v12  ;;  %1069 = vmatprep.subr.bf16.mxu1 %v1334_v12  ;;  %v513_v13 = vld [vmem:[%s1490_s28] sm:$0xf]  ;;  %v668_v23 = vlaneseq  ;;  %s1034_s21 = sshll.u32 %s1303_s12, 3  ;;  %v1336_v34 = vmov 0   ;;  %v678_v35 = vld [vmem:[#allocation3] sm:$0xff]  ;;  %vm700_vm10 = vcmask 7168  }
 0x11e   : > { %1064 = vmatpush3.bf16.msra.mxu0 %v1194_v11  ;;  %1065 = vmatprep.mubr.msk.bf16.mxu0 %vm1335_vm6, %v1334_v12  ;;  %v1195_v21 = vld [vmem:[%s434_s29] sm:$0xff]   ;;  %v671_v25 = vstv %s1034_s21  ;;  %vm714_vm11 = vcmask 1043456   ;;  %p761_p12 = scmp.eq.s32.totalorder %s1303_s12, 1  ;;  %v694_v53 = vld [vmem:[#allocation4] sm:$0xff]  ;;  %v702_v57 = vld [vmem:[#allocation5] sm:$0xff]  ;;  %p1036_p0 = scmp.ne.s32.totalorder %s1303_s12, 1 }
 0x11f   : > { %1075 = vmatprep.subr.bf16.mxu0 %v1334_v12  ;;  %1071 = vmatprep.mubr.msk.bf16.mxu1 %vm1335_vm6, %v1334_v12  ;;  %v566_v22 = vld [vmem:[%s1495_s25] sm:$0xf]  ;;  %v669_v24 = vand.u32 127, %v668_v23  ;;  %v1337_v2 = vmov (!%p1036_p0), 0   ;;  %v1338_v4 = vmov (!%p1036_p0), 0.0   ;;  %vm1339_vm12 = vmmov (!%p1036_p0), 0  }
 0x120   : > { %1070 = vmatpush3.bf16.msra.mxu1 %v1195_v21  ;;  %1192 = vset.pattern.permute.xlu0 %v1336_v34  ;;  %v776_v3 = vld [vmem:[%s1517_s2] sm:$0xf] (!%p1036_p0)  ;;  %vm824_vm13 = vcmask (!%p1036_p0), 261120  }
 0x121   : > { %1066 = vmatmul.mubr.msk.bf16.vlgmr.msra.gmra.mrb[0].mxu0 %vm522_vm7, %v513_v13  ;;  %1081 = vmatprep.subr.bf16.mxu1 %v1334_v12  ;;  %v672_v26 = vadd.s32 %v671_v25, %v669_v24  ;;  %v781_v5 = vsel (!%p1036_p0), %vm714_vm11, %v776_v3, 0  ;;  %v774_v11 = vld [vmem:[#allocation6] sm:$0xff] (!%p1036_p0) }
 0x122   : > { %1077 = vmatprep.mubr.msk.bf16.mxu0 %vm1335_vm6, %v1334_v12  ;;  %v618_v20 = vld [vmem:[#allocation2] sm:$0xf]  ;;  %v673_v27 = vstv %s667_s23  ;;  %1193 = vset.pattern.permute.xlu1 %v1336_v34 }
 0x123   : > { %1072 = vmatmul.mubr.msk.bf16.vlgmr.msra.gmra.mrb[0].mxu1 %vm522_vm7, %v566_v22  ;;  %vm674_vm9 = vcmp.lt.s32.totalorder %v672_v26, %v673_v27 }
 0x124   : > { %1083 = vmatprep.mubr.msk.bf16.mxu1 %vm1335_vm6, %v1334_v12 }
 0x1f4   : > { %v560_v14 = vpop.f32.mrb[0].mxu0 }
 0x1f5   : > { %v619_v15 = vpack.c.bf16 %v560_v14, %v560_v14  ;;  %v1067_v16 = vpop.f32.mrb[1].mxu0 }
 0x1f6   : > { %v563_v17 = vpop.f32.mrb[2].mxu0  ;;  %v612_v39 = vpop.f32.mrb[0].mxu1 }
 0x1f7   : > { %v625_v18 = vsel %vm620_vm8, %v619_v15, 0  ;;  %v1068_v19 = vpop.f32.mrb[3].mxu0  ;;  %v710_v40 = vpack.c.bf16 %v612_v39, %v612_v39  ;;  %v1073_v41 = vpop.f32.mrb[1].mxu1 }
 0x1f8   : > { %1076 = vmatpush3.bf16.xpose.msra.mxu0 %v625_v18  ;;  %v615_v42 = vpop.f32.mrb[2].mxu1 }
 0x1f9   : > { %v716_v43 = vsel %vm714_vm11, %v710_v40, 0  ;;  %v1074_v44 = vpop.f32.mrb[3].mxu1  ;;  %1087 = vmatprep.subr.bf16.mxu0 (!%p1036_p0), %v1338_v4 }
 0x1fa   : > { %1082 = vmatpush3.bf16.msra.mxu1 %v716_v43 }
 0x1ff   : > { %1078 = vmatmul.mubr.msk.bf16.vlgmr.msra.gmra.mrb[4].mxu0 %vm620_vm8, %v618_v20 }
 0x200   : > { %1089 = vmatprep.mubr.msk.bf16.mxu0 (!%p1036_p0), %vm1339_vm12, %v1338_v4  ;;  %1088 = vmatpush3.bf16.msra.mxu0 (!%p1036_p0), %v781_v5 }
 0x2d2   : > { %v661_v28 = vpop.f32.mrb[4].mxu0 }
 0x2d3   : > { %v677_v29 = vsel %vm674_vm9, %v661_v28, -1000000.0  ;;  %v1079_v30 = vpop.f32.mrb[5].mxu0 }
 0x2d4   : > { %v664_v31 = vpop.f32.mrb[6].mxu0  ;;  %v679_v32 = vsel %vm620_vm8, %v677_v29, -inf }
 0x2d5   : > { %680 = vmax.xlane.f32.xlu0 %v679_v32  ;;  %v1080_v33 = vpop.f32.mrb[7].mxu0 }
 0x362   : > { %v681_v36 = vpop.xlane.xlu0 %680 }
 0x363   : > { %v682_v37 = vmax.f32 %v678_v35, %v681_v36 }
 0x365   : > { %v683_v38 = vsub.f32 %v678_v35, %v682_v37  ;;  %760 = vst.msk [vmem:[#allocation3] sm:$0xff] %vm700_vm10, %v682_v37  ;;  %688 = vperm.xlu0 %1192, %v682_v37  }
 0x367   : > { %v684_v51 = vmul.f32 1.442695, %v683_v38 }
 0x369   : > { %1200 = vset.pattern.permute.xlu0 (!%p1036_p0), %v1337_v2 }
 0x3e4   : > { %v689_v45 = vpop.permute.xlu0 %688 }
 0x3e5   : > { %v691_v46 = vsub.f32 %v677_v29, %v689_v45 }
 0x3e7   : > { %v692_v47 = vmul.f32 1.442695, %v691_v46 }
 0x3e9   : > { %1196 = vpow2.f32 %v692_v47 }
 0x3ea   : > { %1198 = vpow2.f32 %v684_v51 }
 0x3f3   : > { %v1197_v48 = vpop.eup %1196 }
 0x3f4   : > { %v696_v49 = vsel %vm620_vm8, %v1197_v48, 0.0  ;;  %v709_v50 = vpack.c.bf16 %v1197_v48, %v1197_v48  ;;  %v1199_v52 = vpop.eup %1198 }
 0x3f5   : > { %697 = vadd.xlane.f32.xlu1 %v696_v49  ;;  %v695_v54 = vmul.f32 %v1199_v52, %v694_v53 }
 0x3f6   : > { %1084 = vmatmul.mubr.msk.bf16.vlgmr.msra.gmra.mrb[4].mxu1 %vm620_vm8, %v709_v50 }
 0x406   : > { %705 = vperm.xlu1 %1193, %v1199_v52  }
 0x482   : > { %v698_v55 = vpop.xlane.xlu1 %697 }
 0x483   : > { %v699_v56 = vadd.f32 %v698_v55, %v695_v54 }
 0x485   : > { %701 = vst.msk [vmem:[#allocation4] sm:$0xff] %vm700_vm10, %v699_v56 }
 0x486   : > { %v706_v58 = vpop.permute.xlu1 %705 }
 0x487   : > { %v708_v59 = vmul.f32 %v706_v58, %v702_v57 }
 0x48c   : > { %v766_v1 = vld [vmem:[#allocation4] sm:$0xff] (!%p1036_p0) }
 0x48d   : > { %769 = vperm.xlu0 (!%p1036_p0), %1200, %v766_v1  }
 0x4c6   : > { %764 = sbr.rel (%p1036_p0) target bundleno = 1523 (0x5f3), region = 60 }
 0x4c9   : > { %v752_v60 = vpop.f32.mrb[4].mxu1 }
 0x4ca   : > { %v758_v61 = vadd.f32 %v752_v60, %v708_v59  ;;  %v1085_v62 = vpop.f32.mrb[5].mxu1 }
 0x4cb   : > { %v755_v63 = vpop.f32.mrb[6].mxu1 }
 0x4cc   : > { %759 = vst.msk [vmem:[#allocation5] sm:$0xff] %vm620_vm8, %v758_v61  ;;  %v1086_v0 = vpop.f32.mrb[7].mxu1 }
 0x4d3   : > { %v765_v7 = vld [vmem:[#allocation5] sm:$0xff] }
 0x50c   : > { %v770_v6 = vpop.permute.xlu0 %769 }
 0x50d   : > { %1201 = vrcp.f32 %v770_v6 }
 0x517   : > { %v1202_v8 = vpop.eup %1201 }
 0x518   : > { %v773_v9 = vmul.f32 %v1202_v8, %v765_v7 }
 0x51a   : > { %v775_v10 = vpack.c.bf16 %v773_v9, %v773_v9 }
 0x51c   : > { %1090 = vmatmul.mubr.msk.bf16.vlgmr.msra.gmra.mrb[0].mxu0 %vm620_vm8, %v775_v10 }
 0x5ef   : > { %v817_v12 = vpop.f32.mrb[0].mxu0 }
 0x5f0   : > { %v823_v13 = vadd.f32 %v817_v12, %v774_v11  ;;  %v1091_v14 = vpop.f32.mrb[1].mxu0 }
 0x5f1   : > { %v820_v15 = vpop.f32.mrb[2].mxu0 }
 0x5f2   : > { %825 = vst.msk [vmem:[#allocation6] sm:$0xff] %vm824_vm13, %v823_v13  ;;  %v1092_v16 = vpop.f32.mrb[3].mxu0 }
 0x5f3 PF: > { %p826_p1 = scmp.eq.s32.totalorder %s1307_s13, 3 }
 0x5f5   : > { %p827_p2 = pnand %p826_p1, %p761_p12 }
 0x5f6   : > { %vm832_vm14 = vcmask (!%p827_p2), 261120  }
 0x5f7   : > { %830 = sbr.rel (%p827_p2) target bundleno = 1534 (0x5fe), region = 64 }
 0x5f9   : > { %v831_v17 = vld [vmem:[#allocation6] sm:$0xff] (!%p827_p2) }
 0x5fa   : > { %833 = vst.msk [vmem:[%s399_s3] sm:$0xff] (!%p827_p2), %vm832_vm14, %v831_v17 }
 0x5fe PF: > { %s1039_s2 = sshll.u32 %s1311_s14, 7  ;;  %s848_s12 = sshll.u32 %s399_s3, 4  ;;  %s849_s12 = int_to_ptr.vmem [resolvable:$true] %s848_s12 }
 0x5ff   : > { %s1565_s19 = scalar_lea.hbm %s1630_s8, %s1039_s2  ;;  %s1657_s13 = sand.u32 1, %s1295_s11  }
 0x600   : > { %s835_s15 = scalar_lea.sflag [#allocation10], %s1657_s13  ;;  %s1215_s16 = scalar_lea.vmem %s849_s12, 128 }
 0x601   : > { %p1216_p3 = scmp.ne.s32.totalorder %s849_s12, %s1215_s16  ;;  %s1340_s20 = smov [#allocation9]  }
 0x602   : > { %s1219_s26 = sshll.u32 %s1340_s20, 4  ;;  %s1220_s26 = int_to_ptr.vmem [resolvable:$false] %s1219_s26 }
 0x603   : > { %p1217_p4 = pnand %p1216_p3, %p1451_p11  ;;  %s1221_s0 = scalar_lea.vmem %s1220_s26, 256 }
 0x604   : > { %p1222_p6 = scmp.lt.s32.totalorder %s849_s12, %s1220_s26  ;;  %p1223_p7 = scmp.lt.s32.totalorder %s1221_s0, %s1215_s16 }
 0x605   : > { %p1218_p5 = pneg %p1217_p4 }
 0x606   : > { %p1224_p8 = por %p1223_p7, %p1222_p6 }
 0x608   : > { %p1225_p9 = pnand %p1224_p8, %p1218_p5 }
 0x60a   : > { %1228 = shalt.err (!%p1225_p9)
}
 0x60b   : > { %s1229_s3 = scalar_lea.hbm %s1565_s19, 128  ;;  %s1233_s17 = scalar_lea.hbm %s1630_s8, 256 }
 0x60c   : > { %p1230_p10 = scmp.ne.s32.totalorder %s1565_s19, %s1229_s3  ;;  %p1234_p1 = scmp.lt.u32.totalorder %s1565_s19, %s1630_s8 }
 0x60d   : > { %p1235_p2 = scmp.lt.u32.totalorder %s1233_s17, %s1229_s3  ;;  %p1237_p4 = scmp.lt.u32.totalorder %s1229_s3, %s1565_s19 }
 0x60e   : > { %p1231_p12 = pnand %p1230_p10, %p1451_p11 }
 0x60f   : > { %p1236_p3 = por %p1235_p2, %p1234_p1 }
 0x610   : > { %p1232_p0 = pneg %p1231_p12 }
 0x611   : > { %p1238_p5 = por %p1237_p4, %p1236_p3 }
 0x613   : > { %p1239_p6 = pnand %p1238_p5, %p1232_p0 }
 0x615   : > { %1242 = shalt.err (!%p1239_p6)
}
 0x616   : > { %1093 = dma.vmem_to_hbm [thread:$0]  (%p1451_p11), %s849_s12, 128, %s1565_s19, %s835_s15  }
 0x617 PF: > { %s1658_s1 = sld [smem:[#allocation13_spill]]  ;;  %p1099_p7 = scmp.ge.s32.totalorder %s1327_s18, 2 }
 0x619   : > { %p1096_p8 = pnand %p1099_p7, %p1459_p13 }
 0x61d   : > { %s860_s22 = sand.u32 1, %s1658_s1  }
 0x61e   : > { %s861_s28 = scalar_lea.sflag [#allocation10], %s860_s22 }
 0x61f   : > { %1286 = dma.done.wait (!%p1096_p8), %s861_s28, 128  }
 0x620   : > { %1288 = vsyncadd (!%p1096_p8), %s861_s28, 4294967168  ;;  %s27_s18 = sadd.s32 1, %s1327_s18   ;;  %s1660_s23 = sld [smem:[#allocation14_spill]] }
 0x621   : > { %p24_p9 = scmp.ge.s32.totalorder %s27_s18, 18   ;;  %s1661_s0 = sld [smem:[#allocation22_spill]] }
 0x622   : > { %s1662_s12 = sld [smem:[#allocation15_spill]]  ;;  %s1663_s13 = sld [smem:[#allocation16_spill]] }
 0x623   : > { %s1664_s14 = sld [smem:[#allocation17_spill]]  ;;  %s1665_s15 = sld [smem:[#allocation18_spill]] }
 0x624   : > { %s1666_s16 = sld [smem:[#allocation19_spill]]  ;;  %s1667_s17 = sld [smem:[#allocation21_spill]] }
 0x625   : > { %s1668_s10 = smov %s1295_s11  ;;  %26 = sbr.rel (!%p24_p9) target bundleno = 22 (0x16), region = 117 }
 0x626   : > { %s1669_s11 = smov %s1660_s23 }
 0x62c   :  { %866 = vsyncpa [#allocation10], 1 }
 0x62d   :  { %868 = vsyncpa [#allocation10 + $0x1], 1 }

</bundles_post_ra>
